<compile_context>
chip_gen: v7x
topology: tpu7x:2x2x1
jax: 0.10.0
libtpu: 0.0.40
codegen_flags: <defaults>
</compile_context>

<pallas_src>
import jax
import jax.numpy as jnp
from jax.experimental import pallas as pl
from jax.experimental.pallas import tpu as pltpu


# ----------------------------------------------------------------------------
# Scalar kernel: exact mirror of the PyTorch forward.  Two SMEM reads, one
# SMEM write, 4 FLOPs on the scalar/1-elem VPU path.  No grid, no VMEM, no DMA.
# ----------------------------------------------------------------------------
def quadratic_kernel(arg_ref, out_ref):
    a0 = arg_ref[0]
    a1 = arg_ref[1]
    out_ref[0] = 8.0 * a0 * a0 + 0.5 * a1 * a1


def _quadratic_pallas(arg):
    out = pl.pallas_call(
        quadratic_kernel,
        out_shape=jax.ShapeDtypeStruct((1,), jnp.float32),
        in_specs=[pl.BlockSpec(memory_space=pltpu.SMEM)],
        out_specs=pl.BlockSpec(memory_space=pltpu.SMEM),
        # 4 FLOPs, 0 transcendentals, 8B in + 4B out -> tell XLA it's free.
        cost_estimate=pl.CostEstimate(flops=4, transcendentals=0, bytes_accessed=12),
    )(arg)
    # Rank-only reshape (metadata), NOT a slice: no extra dispatched HLO.
    return out.reshape(())


# Analytic VJP so the module is trainable (pallas_call has no autodiff rule).
@jax.custom_vjp
def quadratic_forward(arg):
    return _quadratic_pallas(arg)


def _quadratic_fwd(arg):
    return quadratic_forward(arg), arg


def _quadratic_bwd(arg, g):
    # d/darg0 = 16*arg0 ; d/darg1 = 1*arg1  -- plain jnp, fuses into one op.
    return (g * jnp.array([16.0, 1.0], dtype=arg.dtype) * arg,)


quadratic_forward.defvjp(_quadratic_fwd, _quadratic_bwd)

# jit the public entry point so dispatch/tracing is cached.
quadratic_forward_jit = jax.jit(quadratic_forward)


# ----------------------------------------------------------------------------
# Batched kernel: evaluate N parameter vectors at once.
# Input layout (2, N): row 0 = arg0 values, row 1 = arg1 values.
# Output (N,): lane-dense (N multiple of 128) -> unmasked vector stores.
# One vectorized VPU pass, no grid needed at these sizes.
# ----------------------------------------------------------------------------
def quadratic_batched_kernel(x_ref, o_ref):
    a0 = x_ref[0, :]
    a1 = x_ref[1, :]
    o_ref[...] = 8.0 * a0 * a0 + 0.5 * a1 * a1


@jax.jit
def quadratic_forward_batched(args_2xN):
    n = args_2xN.shape[1]
    return pl.pallas_call(
        quadratic_batched_kernel,
        out_shape=jax.ShapeDtypeStruct((n,), jnp.float32),
        in_specs=[pl.BlockSpec(memory_space=pltpu.VMEM)],
        out_specs=pl.BlockSpec(memory_space=pltpu.VMEM),
        cost_estimate=pl.CostEstimate(
            flops=4 * n, transcendentals=0, bytes_accessed=(2 * n + n) * 4
        ),
    )(args_2xN)


class Quadratic:
    """Mirror of the PyTorch module; `arg` is the trainable parameter."""

    def __init__(self, start=None):
        if start is None:
            start = jnp.array([1.0, 1.0], dtype=jnp.float32)
        self.arg = jnp.asarray(start, dtype=jnp.float32)

    def __call__(self, *unused_input):
        # forward ignores its inputs, exactly like the PyTorch module.
        return quadratic_forward_jit(self.arg)


if __name__ == "__main__":
    key = jax.random.PRNGKey(0)
    # Deterministic dummy input (unused by the forward, as in PyTorch).
    dummy_x = jax.random.normal(key, (2, 4), dtype=jnp.float32)

    # --- scalar forward -----------------------------------------------------
    model = Quadratic(start=jnp.array([1.0, 1.0], dtype=jnp.float32))
    out = jax.block_until_ready(model(dummy_x))
    expected = 8.0 * 1.0 ** 2 + 0.5 * 1.0 ** 2  # 8.5
    assert abs(float(out) - expected) < 1e-6, f"got {float(out)}, want {expected}"

    # --- gradient (now works thanks to custom_vjp) ---------------------------
    g = jax.block_until_ready(jax.grad(quadratic_forward)(model.arg))
    assert jnp.allclose(g, jnp.array([16.0, 1.0], dtype=jnp.float32), atol=1e-6), g

    # --- batched forward (amortizes dispatch over many parameter vectors) ----
    n = 1024  # lane-dense: multiple of 128
    batched_args = jax.random.normal(key, (2, n), dtype=jnp.float32)
    batched_out = jax.block_until_ready(quadratic_forward_batched(batched_args))
    batched_ref = 8.0 * batched_args[0] ** 2 + 0.5 * batched_args[1] ** 2
    assert jnp.allclose(batched_out, batched_ref, rtol=1e-6, atol=1e-6)

    # TODO(synk): SGD training loop from the PyTorch harness is host-side and
    # intentionally not reproduced here.
    print("KERNEL_OK")
</pallas_src>

<mosaic_0001>
module attributes {stable_mosaic.version = 11 : i64} {
  func.func @quadratic_kernel(%arg0: memref<2xf32, #tpu.memory_space<smem>>, %arg1: memref<1xf32, #tpu.memory_space<smem>>) attributes {dimension_semantics = [], scalar_prefetch = 0 : i64, scratch_operands = 0 : i64, tpu.core_type = #tpu.core_type<tc>} {
    %c0 = arith.constant 0 : index
    %0 = memref.load %arg0[%c0] : memref<2xf32, #tpu.memory_space<smem>>
    %c1 = arith.constant 1 : index
    %1 = memref.load %arg0[%c1] : memref<2xf32, #tpu.memory_space<smem>>
    %cst = arith.constant 8.000000e+00 : f32
    %2 = arith.mulf %cst, %0 : f32
    %3 = arith.mulf %2, %0 : f32
    %cst_0 = arith.constant 5.000000e-01 : f32
    %4 = arith.mulf %cst_0, %1 : f32
    %5 = arith.mulf %4, %1 : f32
    %6 = arith.addf %3, %5 : f32
    %c0_1 = arith.constant 0 : index
    %7 = memref.load %arg1[%c0_1] : memref<1xf32, #tpu.memory_space<smem>>
    memref.store %6, %arg1[%c0_1] : memref<1xf32, #tpu.memory_space<smem>>
    return
  }
}

</mosaic_0001>

<bundles_post_ra>
// kernel: quadratic_forward.1
= control target key start
LH: loop header
LB: loop body
LE: loop exit
PB: predicated region body
PF: predicated region fallthrough
CT: control target
= control target key end

     0   :  { %6 = vsyncpa [#allocation3], 0  ;;  %s106_s0 = inlined_call_operand.hbm [shape: f32[2], index: 0, kind: input, shape index: {}]   ;;  %s107_s1 = inlined_call_operand.hbm [shape: f32[1], index: 1, kind: output, shape index: {}]  }
   0x1   :  { %7 = vsyncpa [#allocation4], 0  ;;  %s46_s8 = scalar_lea.hbm %s106_s0, 16 }
   0x2   :  { %p47_p0 = scmp.ne.s32.totalorder %s106_s0, %s46_s8  ;;  %p50_p1 = scmp.lt.u32.totalorder %s46_s8, %s106_s0 }
   0x4   :  { %p52_p2 = pnand %p50_p1, %p47_p0 }
   0x6   :  { %55 = shalt.err (!%p52_p2)
}
   0x7   :  { %s70_s13 = smov [#allocation2]  }
   0x8   :  { %15 = dma.hbm_to_smem %s106_s0, 16, %s70_s13, [#allocation3]  }
   0x9   :  { %66 = dma.done.wait [#allocation3], 16  }
   0xa   :  { %67 = vsyncadd [#allocation3], 4294967280 }
   0xb   :  { %19 = sfence }
   0xc   :  { %s20_s16 = sld [smem:[#allocation2]]  ;;  %s43_s17 = sld [smem:[#allocation2 + $0x1]] }
   0xd   :  { %s56_s25 = scalar_lea.hbm %s107_s1, 16 }
   0xe   :  { %p57_p3 = scmp.ne.s32.totalorder %s107_s1, %s56_s25  ;;  %p60_p4 = scmp.lt.u32.totalorder %s56_s25, %s107_s1 }
  0x10   :  { %p62_p5 = pnand %p60_p4, %p57_p3 }
  0x12   :  { %s22_s18 = smul.f32 8.0, %s20_s16 }
  0x13   :  { %s24_s19 = smul.f32 0.5, %s43_s17 }
  0x14   :  { %s23_s20 = smul.f32 %s22_s18, %s20_s16 }
  0x15   :  { %s25_s21 = smul.f32 %s43_s17, %s24_s19 }
  0x17   :  { %s26_s22 = sadd.f32 %s25_s21, %s23_s20 }
  0x19   :  { %28 = sst [smem:[#allocation5]] %s26_s22 }
  0x1a   :  { %65 = shalt.err (!%p62_p5)
}
  0x1b   :  { %s71_s29 = smov [#allocation5]  }
  0x1c   :  { %36 = dma.smem_to_hbm %s71_s29, 16, %s107_s1, [#allocation4]  }
  0x1d   :  { %68 = dma.done.wait [#allocation4], 16  }
  0x1e   :  { %69 = vsyncadd [#allocation4], 4294967280 }
  0x1f   :  { %40 = sfence }
  0x20   :  { %41 = vsyncpa [#allocation3], 1 }
  0x21   :  { %42 = vsyncpa [#allocation4], 1 }

</bundles_post_ra>
